<compile_context>
chip_gen: v7x
topology: tpu7x:2x2x1
jax: 0.10.0
libtpu: 0.0.40
codegen_flags: <defaults>
</compile_context>

<pallas_src>
import jax
import jax.numpy as jnp
from jax.experimental import pallas as pl
from jax.experimental.pallas import tpu as pltpu


def _round_up(x, m):
    return ((x + m - 1) // m) * m


def _ffn_kernel(x_ref, w1_ref, b1_ref, w2_ref, b2_ref, o_ref, acc_ref):
    # x_ref : (tm, d_model)      w1_ref : (d_model, tf)   b1_ref : (1, tf)
    # w2_ref: (tf, d_model)      b2_ref : (1, d_model)
    # o_ref : (tm, d_model)      acc_ref: (tm, d_model) f32 scratch
    k = pl.program_id(1)

    @pl.when(k == 0)
    def _init():
        acc_ref[...] = jnp.zeros_like(acc_ref)

    # First matmul in the operands' native dtype (bf16 stays native on the
    # MXU); accumulate in f32 via preferred_element_type.
    h = jnp.dot(x_ref[...], w1_ref[...], preferred_element_type=jnp.float32)
    h = jnp.maximum(h + b1_ref[...].astype(jnp.float32), 0.0)   # bias + ReLU

    # TODO(synk): training-mode dropout (p=0.1) omitted; eval-mode dropout is identity.

    acc_ref[...] += jnp.dot(h.astype(w2_ref.dtype), w2_ref[...],
                            preferred_element_type=jnp.float32)

    @pl.when(k == pl.num_programs(1) - 1)
    def _finalize():
        o_ref[...] = (acc_ref[...] + b2_ref[...].astype(jnp.float32)).astype(o_ref.dtype)


def positionwise_feed_forward(x, w1, b1, w2, b2, *, tm=256, tf=512):
    """FFN(x) = relu(x @ W1 + b1) @ W2 + b2  (eval mode).

    x : (batch, seq, d_model)   w1 : (d_model, d_ff)   b1 : (d_ff,)
    w2: (d_ff, d_model)         b2 : (d_model,)
    """
    batch, seq, d_model = x.shape
    d_ff = w1.shape[1]
    M = batch * seq

    # Sublane granularity for the row tile: 8 for 4-byte dtypes, 16 for bf16/f16.
    sub = 16 if jnp.dtype(x.dtype).itemsize == 2 else 8

    # Row tile: as large as requested, but never larger than the padded row count.
    tm = max(sub, min(_round_up(tm, sub), _round_up(M, sub)))
    M_pad = _round_up(M, tm)

    # d_ff tile: whole (small) d_ff, or a 128-aligned slice of it.
    if d_ff <= tf:
        tf = d_ff
        d_ff_pad = d_ff
    else:
        tf = max(128, _round_up(tf, 128))
        d_ff_pad = _round_up(d_ff, tf)

    # Advisory cost estimate (original, unpadded problem size).
    itemsize = lambda a: jnp.dtype(a.dtype).itemsize
    cost = pl.CostEstimate(
        flops=4 * M * d_model * d_ff,          # two (M, d_model, d_ff) matmuls
        transcendentals=0,
        bytes_accessed=(M * d_model * itemsize(x)
                        + d_model * d_ff * itemsize(w1) + d_ff * itemsize(b1)
                        + d_ff * d_model * itemsize(w2) + d_model * itemsize(b2)
                        + M * d_model * itemsize(x)),
    )

    # Zero-pad rows and d_ff up to the tiles (padding contributes 0 to the output).
    x2 = x.reshape(M, d_model)
    if M_pad != M:
        x2 = jnp.pad(x2, ((0, M_pad - M), (0, 0)))
    if d_ff_pad != d_ff:
        w1 = jnp.pad(w1, ((0, 0), (0, d_ff_pad - d_ff)))
        b1 = jnp.pad(b1, (0, d_ff_pad - d_ff))
        w2 = jnp.pad(w2, ((0, d_ff_pad - d_ff), (0, 0)))
    b1_2 = b1.reshape(1, d_ff_pad)
    b2_2 = b2.reshape(1, d_model)

    grid = (M_pad // tm, d_ff_pad // tf)

    # Explicit VMEM budget: double-buffered tiles + f32 accumulator + headroom,
    # clamped to what every TPU generation physically has (v7x: 64 MiB / TC).
    tile_bytes = (tm * d_model * itemsize(x)        # x tile
                  + d_model * tf * itemsize(w1)     # W1 tile
                  + tf * itemsize(b1)               # b1 tile
                  + tf * d_model * itemsize(w2)     # W2 tile
                  + d_model * itemsize(b2)          # b2 tile
                  + tm * d_model * itemsize(x))     # out tile
    acc_bytes = tm * d_model * 4
    vmem_limit = int(min(64 * 1024 * 1024,
                         max(32 * 1024 * 1024,
                             2 * tile_bytes + acc_bytes + (4 << 20))))

    out = pl.pallas_call(
        _ffn_kernel,
        out_shape=jax.ShapeDtypeStruct((M_pad, d_model), x.dtype),
        grid_spec=pltpu.PrefetchScalarGridSpec(
            num_scalar_prefetch=0,
            grid=grid,
            in_specs=[
                pl.BlockSpec((tm, d_model), lambda i, k: (i, 0)),   # x rows
                pl.BlockSpec((d_model, tf), lambda i, k: (0, k)),   # W1 d_ff slice
                pl.BlockSpec((1, tf), lambda i, k: (0, k)),         # b1 slice
                pl.BlockSpec((tf, d_model), lambda i, k: (k, 0)),   # W2 d_ff slice
                pl.BlockSpec((1, d_model), lambda i, k: (0, 0)),    # b2
            ],
            out_specs=pl.BlockSpec((tm, d_model), lambda i, k: (i, 0)),
            scratch_shapes=[pltpu.VMEM((tm, d_model), jnp.float32)],
        ),
        compiler_params=pltpu.CompilerParams(
            dimension_semantics=("parallel", "arbitrary"),
            vmem_limit_bytes=vmem_limit,
        ),
        cost_estimate=cost,
    )(x2, w1, b1_2, w2, b2_2)

    if M_pad != M:
        out = out[:M]
    return out.reshape(batch, seq, d_model)


def _make_params(key, d_model, d_ff, dtype=jnp.float32):
    # Mimics nn.Linear's U(-1/sqrt(fan_in), 1/sqrt(fan_in)) init.
    kw1, kb1, kw2, kb2 = jax.random.split(key, 4)
    lim1 = 1.0 / jnp.sqrt(jnp.float32(d_model))
    lim2 = 1.0 / jnp.sqrt(jnp.float32(d_ff))
    w1 = jax.random.uniform(kw1, (d_model, d_ff), dtype, -lim1, lim1)
    b1 = jax.random.uniform(kb1, (d_ff,), dtype, -lim1, lim1)
    w2 = jax.random.uniform(kw2, (d_ff, d_model), dtype, -lim2, lim2)
    b2 = jax.random.uniform(kb2, (d_model,), dtype, -lim2, lim2)
    return w1, b1, w2, b2


def _ref(x, w1, b1, w2, b2):
    hp = jax.lax.Precision.HIGHEST
    h = jnp.maximum(jnp.matmul(x, w1, precision=hp) + b1, 0.0)
    return jnp.matmul(h, w2, precision=hp) + b2


if __name__ == "__main__":
    key = jax.random.PRNGKey(0)
    k1, k2, k3, k4 = jax.random.split(key, 4)

    # Case 1: tiny shapes, single reduction step (tf clamps to full d_ff).
    batch, seq, d_model, d_ff = 2, 8, 32, 64
    x = jax.random.normal(k1, (batch, seq, d_model), dtype=jnp.float32)
    w1, b1, w2, b2 = _make_params(k2, d_model, d_ff)
    out = jax.block_until_ready(positionwise_feed_forward(x, w1, b1, w2, b2))
    assert out.shape == (batch, seq, d_model)
    assert jnp.allclose(out, _ref(x, w1, b1, w2, b2), atol=1e-4, rtol=1e-4)

    # Case 2: non-divisible row count (padding path) + tiled d_ff reduction (2 steps).
    batch, seq, d_model, d_ff = 2, 13, 32, 256
    x = jax.random.normal(k3, (batch, seq, d_model), dtype=jnp.float32)
    w1, b1, w2, b2 = _make_params(k4, d_model, d_ff)
    out = jax.block_until_ready(
        positionwise_feed_forward(x, w1, b1, w2, b2, tm=256, tf=128))
    assert out.shape == (batch, seq, d_model)
    assert jnp.allclose(out, _ref(x, w1, b1, w2, b2), atol=1e-4, rtol=1e-4)

    print("KERNEL_OK")
</pallas_src>

<mosaic_0001>
module attributes {stable_mosaic.version = 11 : i64} {
  func.func @_ffn_kernel(%arg0: i32, %arg1: i32, %arg2: memref<16x32xf32, #tpu.memory_space<vmem>>, %arg3: memref<32x64xf32, #tpu.memory_space<vmem>>, %arg4: memref<1x64xf32, #tpu.memory_space<vmem>>, %arg5: memref<64x32xf32, #tpu.memory_space<vmem>>, %arg6: memref<1x32xf32, #tpu.memory_space<vmem>>, %arg7: memref<16x32xf32, #tpu.memory_space<vmem>>, %arg8: memref<16x32xf32, #tpu.memory_space<vmem>>) attributes {dimension_semantics = [#tpu.dimension_semantics<parallel>, #tpu.dimension_semantics<arbitrary>], iteration_bounds = array<i64: 1, 1>, scalar_prefetch = 0 : i64, scratch_operands = 1 : i64, tpu.core_type = #tpu.core_type<tc>, window_params = [{transform_indices = @transform_0, window_bounds = array<i64: 16, 32>}, {transform_indices = @transform_1, window_bounds = array<i64: 32, 64>}, {transform_indices = @transform_2, window_bounds = array<i64: 1, 64>}, {transform_indices = @transform_3, window_bounds = array<i64: 64, 32>}, {pipeline_mode = #tpu.pipeline_mode<synchronous>, transform_indices = @transform_4, window_bounds = array<i64: 1, 32>}, {transform_indices = @transform_5, window_bounds = array<i64: 16, 32>}]} {
    %c0_i32 = arith.constant 0 : i32
    %0 = arith.cmpi eq, %arg1, %c0_i32 : i32
    %1 = arith.extui %0 : i1 to i32
    %c0_i32_0 = arith.constant 0 : i32
    %2 = arith.cmpi ne, %1, %c0_i32_0 : i32
    scf.if %2 {
      %cst_16 = arith.constant 0.000000e+00 : f32
      %19 = vector.broadcast %cst_16 : f32 to vector<16x32xf32>
      %c0_17 = arith.constant 0 : index
      %c0_18 = arith.constant 0 : index
      %20 = vector.load %arg8[%c0_17, %c0_18] : memref<16x32xf32, #tpu.memory_space<vmem>>, vector<16x32xf32>
      tpu.vector_store %arg8[%c0_17, %c0_18], %19 {strides = array<i32>} : memref<16x32xf32, #tpu.memory_space<vmem>>, vector<16x32xf32>,
    } else {
    }
    %c0 = arith.constant 0 : index
    %c0_1 = arith.constant 0 : index
    %3 = vector.load %arg2[%c0, %c0_1] : memref<16x32xf32, #tpu.memory_space<vmem>>, vector<16x32xf32>
    %c0_2 = arith.constant 0 : index
    %c0_3 = arith.constant 0 : index
    %4 = vector.load %arg3[%c0_2, %c0_3] : memref<32x64xf32, #tpu.memory_space<vmem>>, vector<32x64xf32>
    %cst = arith.constant dense<0.000000e+00> : vector<16x64xf32>
    %5 = tpu.matmul %3, %4, %cst {dimension_numbers = #tpu.dot_dimension_numbers<[1], [0], [0], [1], [0, 0, 1, 1], [], []>} : vector<16x32xf32>, vector<32x64xf32>, vector<16x64xf32> -> vector<16x64xf32>
    %c0_4 = arith.constant 0 : index
    %c0_5 = arith.constant 0 : index
    %6 = vector.load %arg4[%c0_4, %c0_5] : memref<1x64xf32, #tpu.memory_space<vmem>>, vector<1x64xf32>
    %7 = vector.broadcast %6 : vector<1x64xf32> to vector<16x64xf32>
    %8 = arith.addf %5, %7 : vector<16x64xf32>
    %cst_6 = arith.constant 0.000000e+00 : f32
    %9 = vector.broadcast %cst_6 : f32 to vector<16x64xf32>
    %10 = arith.maximumf %8, %9 : vector<16x64xf32>
    %c0_7 = arith.constant 0 : index
    %c0_8 = arith.constant 0 : index
    %11 = vector.load %arg8[%c0_7, %c0_8] : memref<16x32xf32, #tpu.memory_space<vmem>>, vector<16x32xf32>
    %c0_9 = arith.constant 0 : index
    %c0_10 = arith.constant 0 : index
    %12 = vector.load %arg5[%c0_9, %c0_10] : memref<64x32xf32, #tpu.memory_space<vmem>>, vector<64x32xf32>
    %cst_11 = arith.constant dense<0.000000e+00> : vector<16x32xf32>
    %13 = tpu.matmul %10, %12, %cst_11 {dimension_numbers = #tpu.dot_dimension_numbers<[1], [0], [0], [1], [0, 0, 1, 1], [], []>} : vector<16x64xf32>, vector<64x32xf32>, vector<16x32xf32> -> vector<16x32xf32>
    %14 = arith.addf %11, %13 : vector<16x32xf32>
    %c0_12 = arith.constant 0 : index
    %c0_13 = arith.constant 0 : index
    %15 = vector.load %arg8[%c0_12, %c0_13] : memref<16x32xf32, #tpu.memory_space<vmem>>, vector<16x32xf32>
    tpu.vector_store %arg8[%c0_12, %c0_13], %14 {strides = array<i32>} : memref<16x32xf32, #tpu.memory_space<vmem>>, vector<16x32xf32>,
    %c0_i32_14 = arith.constant 0 : i32
    %16 = arith.cmpi eq, %arg1, %c0_i32_14 : i32
    %17 = arith.extui %16 : i1 to i32
    %c0_i32_15 = arith.constant 0 : i32
    %18 = arith.cmpi ne, %17, %c0_i32_15 : i32
    scf.if %18 {
      %c0_16 = arith.constant 0 : index
      %c0_17 = arith.constant 0 : index
      %19 = vector.load %arg8[%c0_16, %c0_17] : memref<16x32xf32, #tpu.memory_space<vmem>>, vector<16x32xf32>
      %c0_18 = arith.constant 0 : index
      %c0_19 = arith.constant 0 : index
      %20 = vector.load %arg6[%c0_18, %c0_19] : memref<1x32xf32, #tpu.memory_space<vmem>>, vector<1x32xf32>
      %21 = vector.broadcast %20 : vector<1x32xf32> to vector<16x32xf32>
      %22 = arith.addf %19, %21 : vector<16x32xf32>
      %c0_20 = arith.constant 0 : index
      %c0_21 = arith.constant 0 : index
      %23 = vector.load %arg7[%c0_20, %c0_21] : memref<16x32xf32, #tpu.memory_space<vmem>>, vector<16x32xf32>
      tpu.vector_store %arg7[%c0_20, %c0_21], %22 {strides = array<i32>} : memref<16x32xf32, #tpu.memory_space<vmem>>, vector<16x32xf32>,
    } else {
    }
    return
  }
  func.func @transform_0(%arg0: i32, %arg1: i32) -> (i32, i32) {
    %c0_i32 = arith.constant 0 : i32
    %c0_i32_0 = arith.constant 0 : i32
    return %arg0, %c0_i32 : i32, i32
  }
  func.func @transform_1(%arg0: i32, %arg1: i32) -> (i32, i32) {
    %c0_i32 = arith.constant 0 : i32
    %c0_i32_0 = arith.constant 0 : i32
    return %c0_i32, %arg1 : i32, i32
  }
  func.func @transform_2(%arg0: i32, %arg1: i32) -> (i32, i32) {
    %c0_i32 = arith.constant 0 : i32
    %c0_i32_0 = arith.constant 0 : i32
    return %c0_i32, %arg1 : i32, i32
  }
  func.func @transform_3(%arg0: i32, %arg1: i32) -> (i32, i32) {
    %c0_i32 = arith.constant 0 : i32
    %c0_i32_0 = arith.constant 0 : i32
    return %arg1, %c0_i32 : i32, i32
  }
  func.func @transform_4(%arg0: i32, %arg1: i32) -> (i32, i32) {
    %c0_i32 = arith.constant 0 : i32
    %c0_i32_0 = arith.constant 0 : i32
    %c0_i32_1 = arith.constant 0 : i32
    return %c0_i32, %c0_i32_0 : i32, i32
  }
  func.func @transform_5(%arg0: i32, %arg1: i32) -> (i32, i32) {
    %c0_i32 = arith.constant 0 : i32
    %c0_i32_0 = arith.constant 0 : i32
    return %arg0, %c0_i32 : i32, i32
  }
}

</mosaic_0001>

<bundles_post_ra>
// kernel: tpu_custom_call.1
= control target key start
LH: loop header
LB: loop body
LE: loop exit
PB: predicated region body
PF: predicated region fallthrough
CT: control target
= control target key end

     0   :  { %vm25_vm0 = vcmask 261120   ;;  %s459_s0 = inlined_call_operand.vmem [shape: f32[16,32], index: 0, kind: input, shape index: {}]   ;;  %s460_s1 = inlined_call_operand.vmem [shape: f32[32,64], index: 1, kind: input, shape index: {}]   ;;  %s461_s2 = inlined_call_operand.vmem [shape: f32[1,64], index: 2, kind: input, shape index: {}]   ;;  %s462_s3 = inlined_call_operand.vmem [shape: f32[64,32], index: 3, kind: input, shape index: {}]   ;;  %s463_s4 = inlined_call_operand.vmem [shape: f32[1,32], index: 4, kind: input, shape index: {}]   ;;  %s464_s5 = inlined_call_operand.hbm [shape: f32[16,32], index: 5, kind: output, shape index: {}]  }
   0x1   :  { %v30_v0 = vld [vmem:[%s460_s1] sm:$0xff]  ;;  %v31_v1 = vld [vmem:[%s460_s1 + $0x8] sm:$0xff]  ;;  %v32_v2 = vld [vmem:[%s460_s1 + $0x10] sm:$0xff] }
   0x2   :  { %v305_v3 = vpack.c.bf16 %v31_v1, %v30_v0  ;;  %v33_v4 = vld [vmem:[%s460_s1 + $0x18] sm:$0xff]  ;;  %v28_v5 = vld [vmem:[%s459_s0] sm:$0xff]  ;;  %v128_v8 = vld [vmem:[%s462_s3 + $0x8] sm:$0xff] }
   0x3   :  { %v309_v6 = vpack.c.bf16 %v33_v4, %v32_v2  ;;  %283 = vmatprep.mubr.msk.f32.mxu0 %vm25_vm0, %v28_v5  ;;  %v127_v7 = vld [vmem:[%s462_s3] sm:$0xff]  ;;  %v129_v9 = vld [vmem:[%s462_s3 + $0x10] sm:$0xff]  ;;  %v130_v11 = vld [vmem:[%s462_s3 + $0x18] sm:$0xff] }
   0x4   :  { %306 = vmatprep.subr.bf16.mxu0 %v305_v3  ;;  %v313_v10 = vpack.c.bf16 %v128_v8, %v127_v7  ;;  %v317_v12 = vpack.c.bf16 %v130_v11, %v129_v9  ;;  %v131_v13 = vld [vmem:[%s462_s3 + $0x20] sm:$0xff]  ;;  %v132_v14 = vld [vmem:[%s462_s3 + $0x28] sm:$0xff] }
   0x5   :  { %308 = vmatpush3.bf16.msra.mxu0 %v305_v3 }
   0x6   :  { %10 = vsyncpa [#allocation4], 0  ;;  %310 = vmatprep.subr.bf16.mxu0 %v309_v6  ;;  %314 = vmatprep.subr.bf16.mxu1 %v313_v10  ;;  %v321_v15 = vpack.c.bf16 %v132_v14, %v131_v13  ;;  %v29_v16 = vld [vmem:[%s459_s0 + $0x8] sm:$0xff]  ;;  %v133_v17 = vld [vmem:[%s462_s3 + $0x30] sm:$0xff]  ;;  %v357_v20 = vmov 0.0   ;;  %vm135_vm1 = vcmask 523264  }
   0x7   :  { %316 = vmatpush3.bf16.msra.mxu1 %v313_v10  ;;  %v134_v18 = vld [vmem:[%s462_s3 + $0x38] sm:$0xff]  ;;  %27 = vst.msk [vmem:[#allocation2 + $0x8] sm:$0xff] %vm25_vm0, %v357_v20  ;;  %26 = vst.msk [vmem:[#allocation2] sm:$0xff] %vm25_vm0, %v357_v20  ;;  %v253_v21 = vld [vmem:[%s461_s2] ss:$0 sm:$0xff]  ;;  %s358_s21 = smov [#allocation3]  }
   0x8   :  { %318 = vmatprep.subr.bf16.mxu1 %v317_v12  ;;  %v325_v19 = vpack.c.bf16 %v134_v18, %v133_v17  ;;  %v258_v34 = vld [vmem:[%s463_s4] ss:$0 sm:$0xff]  ;;  %s242_s22 = sshll.u32 %s358_s21, 4  ;;  %s243_s22 = int_to_ptr.vmem [resolvable:$true] %s242_s22 }
   0x9   :  { %312 = vmatpush3.bf16.msra.mxu0 %v309_v6  ;;  %s333_s23 = scalar_lea.vmem %s243_s22, 256  ;;  %p338_p1 = scmp.lt.s32.totalorder %s243_s22, %s243_s22 }
   0xa   :  { %p334_p0 = scmp.ne.s32.totalorder %s243_s22, %s333_s23  ;;  %p339_p2 = scmp.lt.s32.totalorder %s333_s23, %s333_s23 }
   0xb   :  { %320 = vmatpush3.bf16.msra.mxu1 %v317_v12 }
   0xc   :  { %284 = vmatmul.mubr.msk.f32.vlgmr.msra.gmra.mrb[0].mxu0 %vm25_vm0, %v29_v16  ;;  %322 = vmatprep.subr.bf16.mxu1 %v321_v15  ;;  %p340_p3 = por %p339_p2, %p338_p1 }
   0xe   :  { %v126_v28 = vld [vmem:[#allocation2 + $0x8] sm:$0xff]  ;;  %v125_v29 = vld [vmem:[#allocation2] sm:$0xff]  ;;  %p341_p4 = pnand %p340_p3, %p334_p0 }
   0xf   :  { %324 = vmatpush3.bf16.msra.mxu1 %v321_v15 }
  0x10   :  { %326 = vmatprep.subr.bf16.mxu1 %v325_v19 }
  0x13   :  { %328 = vmatpush3.bf16.msra.mxu1 %v325_v19 }
  0xdf   :  { %v285_v22 = vpop.f32.mrb[0].mxu0 }
  0xe0   :  { %v120_v23 = vadd.f32 %v285_v22, %v253_v21  ;;  %v114_v24 = vpop.f32.mrb[1].mxu0 }
  0xe1   :  { %v115_v25 = vadd.f32 %v253_v21, %v114_v24 }
  0xe2   :  { %v124_v27 = vmax.f32 %v120_v23, 0.0 }
  0xe3   :  { %v123_v26 = vmax.f32 %v115_v25, 0.0 }
  0xe5   :  { %302 = vmatprep.mubr.msk.f32.mxu1 %vm135_vm1, %v123_v26 }
  0xe6   :  { %303 = vmatmul.mubr.msk.f32.vlgmr.msra.gmra.mrb[0].mxu1 %vm135_vm1, %v124_v27 }
 0x1b9   :  { %v304_v30 = vpop.f32.mrb[0].mxu1 }
 0x1ba   :  { %v218_v31 = vadd.f32 %v304_v30, %v126_v28  ;;  %v208_v32 = vpop.f32.mrb[1].mxu1 }
 0x1bb   :  { %v217_v33 = vadd.f32 %v208_v32, %v125_v29 }
 0x1bc   :  { %220 = vst.msk [vmem:[#allocation2 + $0x8] sm:$0xff] %vm25_vm0, %v218_v31 }
 0x1bd   :  { %219 = vst.msk [vmem:[#allocation2] sm:$0xff] %vm25_vm0, %v217_v33 }
 0x1c3   :  { %v225_v35 = vld [vmem:[#allocation2 + $0x8] sm:$0xff] }
 0x1c4   :  { %v224_v36 = vld [vmem:[#allocation2] sm:$0xff]  ;;  %v234_v37 = vadd.f32 %v258_v34, %v225_v35 }
 0x1c5   :  { %v233_v38 = vadd.f32 %v258_v34, %v224_v36 }
 0x1c6   :  { %236 = vst.msk [vmem:[#allocation3 + $0x8] sm:$0xff] %vm25_vm0, %v234_v37 }
 0x1c7   :  { %235 = vst.msk [vmem:[#allocation3] sm:$0xff] %vm25_vm0, %v233_v38 }
 0x1c8   :  { %344 = shalt.err (!%p341_p4)
}
 0x1c9   :  { %s345_s25 = scalar_lea.hbm %s464_s5, 256 }
 0x1ca   :  { %p346_p5 = scmp.ne.s32.totalorder %s464_s5, %s345_s25  ;;  %p349_p6 = scmp.lt.u32.totalorder %s345_s25, %s464_s5 }
 0x1cc   :  { %p351_p7 = pnand %p349_p6, %p346_p5 }
 0x1ce   :  { %354 = shalt.err (!%p351_p7)
}
 0x1cf   :  { %s359_s30 = smov 128   ;;  %s360_s6 = smov 8  }
 0x1d0   :  { %248 = dma.vmem_to_hbm [thread:$0]  %s243_s22, 256, %s464_s5, [#allocation4], %s359_s30, %s359_s30, %s360_s6  }
 0x1d1   :  { %355 = dma.done.wait [#allocation4], 256  }
 0x1d2   :  { %356 = vsyncadd [#allocation4], 4294967040 }
 0x1d3   :  { %252 = vsyncpa [#allocation4], 1 }

</bundles_post_ra>
